<compile_context>
chip_gen: v7x
topology: tpu7x:2x2x1
jax: 0.10.0
libtpu: 0.0.40
codegen_flags: <defaults>
</compile_context>

<pallas_src>
import functools

import jax
import jax.numpy as jnp
from jax.experimental import pallas as pl
from jax.experimental.pallas import tpu as pltpu

GAMMA = 2  # FocalLoss(gamma=2) default; handled as an explicit square below.


def _round_up(x: int, m: int) -> int:
    return ((x + m - 1) // m) * m


def _focal_loss_kernel(x_ref, t_ref, out_ref, acc_ref, *, n_valid: int):
    """x_ref: [TILE_N, C] logits, t_ref: [TILE_N, 1] int32 targets,
    out_ref: [1, 1] f32 mean loss, acc_ref: [1, 1] f32 running sum."""
    i = pl.program_id(0)

    @pl.when(i == 0)
    def _():
        acc_ref[...] = jnp.zeros_like(acc_ref)

    x = x_ref[...].astype(jnp.float32)          # [TILE_N, C]
    tn, c = x.shape

    # log_softmax pieces over the class (lane) axis.  The exp feeding the
    # logsumexp is the only unavoidable full-tile transcendental.
    m = jnp.max(x, axis=1, keepdims=True)       # [TILE_N, 1]
    shifted = x - m                             # [TILE_N, C]
    lse = jnp.log(jnp.sum(jnp.exp(shifted), axis=1, keepdims=True))  # [TILE_N, 1]

    # Gather the target-class shifted logit via bool-select + lane reduce
    # (no f32 one-hot temporary).
    col_ids = jax.lax.broadcasted_iota(jnp.int32, (tn, c), 1)
    tmask = col_ids == t_ref[...]               # [TILE_N, C] bool
    shifted_t = jnp.sum(jnp.where(tmask, shifted, 0.0), axis=1, keepdims=True)

    # Focal modulation only on the gathered values: O(TILE_N) EUP work.
    logpt_t = shifted_t - lse                   # [TILE_N, 1]
    pt_t = jnp.exp(logpt_t)                     # [TILE_N, 1]
    om = 1.0 - pt_t
    picked = om * om * logpt_t                  # gamma=2 -> explicit square

    # Mask rows that are padding (beyond the true N) in the last tile.
    row_ids = i * tn + jax.lax.broadcasted_iota(jnp.int32, (tn, 1), 0)
    picked = jnp.where(row_ids < n_valid, picked, 0.0)

    acc_ref[...] += jnp.sum(picked, axis=0, keepdims=True)

    @pl.when(i == pl.num_programs(0) - 1)
    def _():
        # nll_loss(weight=None) mean + negation, single store of the scalar.
        out_ref[...] = acc_ref[...] * jnp.float32(-1.0 / n_valid)


def focal_loss(logits: jax.Array, target: jax.Array) -> jax.Array:
    """logits: [N, C] float, target: [N] int -> scalar f32 focal loss."""
    n, c = logits.shape

    # Tile the sample axis; keep classes whole on the lane axis.  Keep each
    # f32 tile <= ~2 MiB so double-buffered inputs stay far below VMEM limits
    # on every generation (v5e/v6e/v7x), and cap the row count at 2048.
    max_rows_by_vmem = max(8, (2 * 1024 * 1024) // (4 * max(c, 1)))
    tile_n = min(2048, _round_up(max_rows_by_vmem, 8), _round_up(n, 8))
    tile_n = max(8, tile_n)
    n_pad = _round_up(n, tile_n)

    x = logits
    t = target.astype(jnp.int32).reshape(n, 1)
    if n_pad != n:
        # Zero padding keeps padded rows numerically benign (finite); they are
        # masked out of the sum in-kernel.  Padded targets are class 0 (valid).
        x = jnp.pad(x, ((0, n_pad - n), (0, 0)))
        t = jnp.pad(t, ((0, n_pad - n), (0, 0)))

    grid = (n_pad // tile_n,)

    out = pl.pallas_call(
        functools.partial(_focal_loss_kernel, n_valid=n),
        out_shape=jax.ShapeDtypeStruct((1, 1), jnp.float32),
        grid_spec=pltpu.PrefetchScalarGridSpec(
            num_scalar_prefetch=0,
            grid=grid,
            in_specs=[
                pl.BlockSpec((tile_n, c), lambda i: (i, 0)),
                pl.BlockSpec((tile_n, 1), lambda i: (i, 0)),
            ],
            # Same (0, 0) block every step -> resident scalar output.
            out_specs=pl.BlockSpec((1, 1), lambda i: (0, 0)),
            scratch_shapes=[pltpu.VMEM((1, 1), jnp.float32)],
        ),
        compiler_params=pltpu.CompilerParams(
            dimension_semantics=("arbitrary",),
        ),
    )(x, t)
    return out[0, 0]


def _focal_loss_ref(logits, target):
    # Pure-JAX reference mirroring the PyTorch module (gamma=2, weight=None).
    logpt = jax.nn.log_softmax(logits.astype(jnp.float32), axis=1)
    pt = jnp.exp(logpt)
    modulated = (1.0 - pt) ** 2 * logpt
    picked = jnp.take_along_axis(modulated, target[:, None].astype(jnp.int32), axis=1)
    return -jnp.mean(picked)


# TODO(synk): per-class `weight` tensor (non-None) of nn.NLLLoss is not
# implemented; NeuS instantiates FocalLoss() with the default weight=None.

if __name__ == "__main__":
    key = jax.random.PRNGKey(0)
    k_x, k_t, k_x2, k_t2 = jax.random.split(key, 4)

    # Small NeuS-like shape: [N, C] logits, [N] integer class targets.
    N, C = 8, 32
    logits = jax.random.normal(k_x, (N, C), dtype=jnp.float32)
    target = jax.random.randint(k_t, (N,), 0, C, dtype=jnp.int32)

    loss = focal_loss(logits, target)
    jax.block_until_ready(loss)
    ref = _focal_loss_ref(logits, target)
    assert jnp.allclose(loss, ref, atol=1e-5, rtol=1e-5), (loss, ref)

    # Second check exercising the multi-tile / padded-row masking path
    # (N not a multiple of the tile size).
    N2, C2 = 700, 32
    logits2 = jax.random.normal(k_x2, (N2, C2), dtype=jnp.float32)
    target2 = jax.random.randint(k_t2, (N2,), 0, C2, dtype=jnp.int32)

    loss2 = focal_loss(logits2, target2)
    jax.block_until_ready(loss2)
    ref2 = _focal_loss_ref(logits2, target2)
    assert jnp.allclose(loss2, ref2, atol=1e-5, rtol=1e-5), (loss2, ref2)

    print("KERNEL_OK")
</pallas_src>

<mosaic_0001>
module attributes {stable_mosaic.version = 11 : i64} {
  func.func @_focal_loss_kernel(%arg0: i32, %arg1: memref<8x32xf32, #tpu.memory_space<vmem>>, %arg2: memref<8x1xi32, #tpu.memory_space<vmem>>, %arg3: memref<1x1xf32, #tpu.memory_space<vmem>>, %arg4: memref<1x1xf32, #tpu.memory_space<vmem>>) attributes {dimension_semantics = [#tpu.dimension_semantics<arbitrary>], iteration_bounds = array<i64: 1>, scalar_prefetch = 0 : i64, scratch_operands = 1 : i64, tpu.core_type = #tpu.core_type<tc>, window_params = [{transform_indices = @transform_0, window_bounds = array<i64: 8, 32>}, {transform_indices = @transform_1, window_bounds = array<i64: 8, 1>}, {pipeline_mode = #tpu.pipeline_mode<synchronous>, transform_indices = @transform_2, window_bounds = array<i64: 1, 1>}]} {
    %c0_i32 = arith.constant 0 : i32
    %0 = arith.cmpi eq, %arg0, %c0_i32 : i32
    %1 = arith.extui %0 : i1 to i32
    %c0_i32_0 = arith.constant 0 : i32
    %2 = arith.cmpi ne, %1, %c0_i32_0 : i32
    scf.if %2 {
      %cst_17 = arith.constant 0.000000e+00 : f32
      %42 = vector.broadcast %cst_17 : f32 to vector<1x1xf32>
      %c0_18 = arith.constant 0 : index
      %c0_19 = arith.constant 0 : index
      %43 = vector.load %arg4[%c0_18, %c0_19] : memref<1x1xf32, #tpu.memory_space<vmem>>, vector<1x1xf32>
      tpu.vector_store %arg4[%c0_18, %c0_19], %42 {strides = array<i32>} : memref<1x1xf32, #tpu.memory_space<vmem>>, vector<1x1xf32>,
    } else {
    }
    %c0 = arith.constant 0 : index
    %c0_1 = arith.constant 0 : index
    %3 = vector.load %arg1[%c0, %c0_1] : memref<8x32xf32, #tpu.memory_space<vmem>>, vector<8x32xf32>
    %cst = arith.constant dense<0xFF800000> : vector<8xf32>
    %4 = vector.multi_reduction <maximumf>, %3, %cst [1] : vector<8x32xf32> to vector<8xf32>
    %5 = vector.shape_cast %4 : vector<8xf32> to vector<8x1xf32>
    %6 = vector.broadcast %5 : vector<8x1xf32> to vector<8x32xf32>
    %7 = arith.subf %3, %6 : vector<8x32xf32>
    %8 = math.exp %7 : vector<8x32xf32>
    %cst_2 = arith.constant dense<0.000000e+00> : vector<8xf32>
    %9 = vector.multi_reduction <add>, %8, %cst_2 [1] : vector<8x32xf32> to vector<8xf32>
    %10 = vector.shape_cast %9 : vector<8xf32> to vector<8x1xf32>
    %11 = math.log %10 : vector<8x1xf32>
    %12 = tpu.iota {dimensions = array<i32: 1>} : vector<8x32xi32>
    %c0_3 = arith.constant 0 : index
    %c0_4 = arith.constant 0 : index
    %13 = vector.load %arg2[%c0_3, %c0_4] : memref<8x1xi32, #tpu.memory_space<vmem>>, vector<8x1xi32>
    %14 = vector.broadcast %13 : vector<8x1xi32> to vector<8x32xi32>
    %15 = arith.cmpi eq, %12, %14 : vector<8x32xi32>
    %cst_5 = arith.constant 0.000000e+00 : f32
    %16 = vector.broadcast %cst_5 : f32 to vector<8x32xf32>
    %17 = arith.select %15, %7, %16 : vector<8x32xi1>, vector<8x32xf32>
    %cst_6 = arith.constant dense<0.000000e+00> : vector<8xf32>
    %18 = vector.multi_reduction <add>, %17, %cst_6 [1] : vector<8x32xf32> to vector<8xf32>
    %19 = vector.shape_cast %18 : vector<8xf32> to vector<8x1xf32>
    %20 = arith.subf %19, %11 : vector<8x1xf32>
    %21 = math.exp %20 : vector<8x1xf32>
    %cst_7 = arith.constant 1.000000e+00 : f32
    %22 = vector.broadcast %cst_7 : f32 to vector<8x1xf32>
    %23 = arith.subf %22, %21 : vector<8x1xf32>
    %24 = arith.mulf %23, %23 : vector<8x1xf32>
    %25 = arith.mulf %24, %20 : vector<8x1xf32>
    %c8_i32 = arith.constant 8 : i32
    %26 = arith.muli %arg0, %c8_i32 : i32
    %27 = tpu.iota {dimensions = array<i32: 0>} : vector<8x1xi32>
    %28 = vector.broadcast %26 : i32 to vector<8x1xi32>
    %29 = arith.addi %28, %27 : vector<8x1xi32>
    %c8_i32_8 = arith.constant 8 : i32
    %30 = vector.broadcast %c8_i32_8 : i32 to vector<8x1xi32>
    %31 = arith.cmpi slt, %29, %30 : vector<8x1xi32>
    %cst_9 = arith.constant 0.000000e+00 : f32
    %32 = vector.broadcast %cst_9 : f32 to vector<8x1xf32>
    %33 = arith.select %31, %25, %32 : vector<8x1xi1>, vector<8x1xf32>
    %c0_10 = arith.constant 0 : index
    %c0_11 = arith.constant 0 : index
    %34 = vector.load %arg4[%c0_10, %c0_11] : memref<1x1xf32, #tpu.memory_space<vmem>>, vector<1x1xf32>
    %cst_12 = arith.constant dense<0.000000e+00> : vector<1xf32>
    %35 = vector.multi_reduction <add>, %33, %cst_12 [0] : vector<8x1xf32> to vector<1xf32>
    %36 = vector.shape_cast %35 : vector<1xf32> to vector<1x1xf32>
    %37 = arith.addf %34, %36 : vector<1x1xf32>
    %c0_13 = arith.constant 0 : index
    %c0_14 = arith.constant 0 : index
    %38 = vector.load %arg4[%c0_13, %c0_14] : memref<1x1xf32, #tpu.memory_space<vmem>>, vector<1x1xf32>
    tpu.vector_store %arg4[%c0_13, %c0_14], %37 {strides = array<i32>} : memref<1x1xf32, #tpu.memory_space<vmem>>, vector<1x1xf32>,
    %c0_i32_15 = arith.constant 0 : i32
    %39 = arith.cmpi eq, %arg0, %c0_i32_15 : i32
    %40 = arith.extui %39 : i1 to i32
    %c0_i32_16 = arith.constant 0 : i32
    %41 = arith.cmpi ne, %40, %c0_i32_16 : i32
    scf.if %41 {
      %c0_17 = arith.constant 0 : index
      %c0_18 = arith.constant 0 : index
      %42 = vector.load %arg4[%c0_17, %c0_18] : memref<1x1xf32, #tpu.memory_space<vmem>>, vector<1x1xf32>
      %cst_19 = arith.constant -1.250000e-01 : f32
      %43 = vector.broadcast %cst_19 : f32 to vector<1x1xf32>
      %44 = arith.mulf %42, %43 : vector<1x1xf32>
      %c0_20 = arith.constant 0 : index
      %c0_21 = arith.constant 0 : index
      %45 = vector.load %arg3[%c0_20, %c0_21] : memref<1x1xf32, #tpu.memory_space<vmem>>, vector<1x1xf32>
      tpu.vector_store %arg3[%c0_20, %c0_21], %44 {strides = array<i32>} : memref<1x1xf32, #tpu.memory_space<vmem>>, vector<1x1xf32>,
    } else {
    }
    return
  }
  func.func @transform_0(%arg0: i32) -> (i32, i32) {
    %c0_i32 = arith.constant 0 : i32
    %c0_i32_0 = arith.constant 0 : i32
    return %arg0, %c0_i32 : i32, i32
  }
  func.func @transform_1(%arg0: i32) -> (i32, i32) {
    %c0_i32 = arith.constant 0 : i32
    %c0_i32_0 = arith.constant 0 : i32
    return %arg0, %c0_i32 : i32, i32
  }
  func.func @transform_2(%arg0: i32) -> (i32, i32) {
    %c0_i32 = arith.constant 0 : i32
    %c0_i32_0 = arith.constant 0 : i32
    %c0_i32_1 = arith.constant 0 : i32
    return %c0_i32, %c0_i32_0 : i32, i32
  }
}

</mosaic_0001>

<bundles_post_ra>
// kernel: tpu_custom_call.1
= control target key start
LH: loop header
LB: loop body
LE: loop exit
PB: predicated region body
PF: predicated region fallthrough
CT: control target
= control target key end

     0   :  { %vm19_vm0 = vcmask 261120   ;;  %s161_s0 = inlined_call_operand.vmem [shape: f32[8,32], index: 0, kind: input, shape index: {}]   ;;  %s162_s1 = inlined_call_operand.vmem [shape: s32[8,1], index: 1, kind: input, shape index: {}]   ;;  %s163_s2 = inlined_call_operand.hbm [shape: f32[1,1], index: 2, kind: output, shape index: {}]  }
   0x1   :  { %v18_v0 = vld [vmem:[%s161_s0] sm:$0xff] }
   0x2   :  { %7 = vsyncpa [#allocation4], 0  ;;  %v20_v1 = vsel %vm19_vm0, %v18_v0, -inf  ;;  %v119_v2 = vmov 0   ;;  %v33_v3 = vld [vmem:[%s162_s1] sm:$0xff]  ;;  %v31_v7 = vlaneseq  ;;  %vm16_vm2 = vcmask 0  }
   0x3   :  { %88 = vset.pattern.permute.xlu0 %v119_v2  ;;  %v120_v14 = vmov 0.0   ;;  %s121_s0 = smov [#allocation3]  }
   0x4   :  { %21 = vmax.xlane.f32.xlu0 %v20_v1  ;;  %v32_v8 = vand.u32 127, %v31_v7  ;;  %17 = vst.msk [vmem:[#allocation2] sm:$0x1] %vm16_vm2, %v120_v14  ;;  %s77_s1 = sshll.u32 %s121_s0, 4  ;;  %s78_s1 = int_to_ptr.vmem [resolvable:$true] %s77_s1 }
   0x5   :  { %s95_s13 = scalar_lea.vmem %s78_s1, 16  ;;  %s99_s14 = scalar_lea.vmem %s78_s1, 32 }
   0x6   :  { %p96_p0 = scmp.ne.s32.totalorder %s78_s1, %s95_s13  ;;  %p100_p1 = scmp.lt.s32.totalorder %s78_s1, %s78_s1 }
   0x7   :  { %p101_p2 = scmp.lt.s32.totalorder %s99_s14, %s95_s13 }
   0x9   :  { %p102_p3 = por %p101_p2, %p100_p1 }
   0xb   :  { %v55_v30 = vld [vmem:[#allocation2] sm:$0x1]  ;;  %p103_p4 = pnand %p102_p3, %p96_p0 }
  0x1a   :  { %35 = vperm.xlu0 %88, %v33_v3  }
  0x91   :  { %v22_v4 = vpop.xlane.xlu0 %21 }
  0x92   :  { %v23_v5 = vsub.f32 %v18_v0, %v22_v4 }
  0x94   :  { %v24_v6 = vmul.f32 1.442695, %v23_v5 }
  0x96   :  { %89 = vpow2.f32 %v24_v6 }
  0x99   :  { %v36_v9 = vpop.permute.xlu0 %35 }
  0x9a   :  { %vm37_vm1 = vcmp.eq.s32.totalorder %v32_v8, %v36_v9 }
  0x9b   :  { %v38_v12 = vsel %vm37_vm1, %v23_v5, 0.0 }
  0x9c   :  { %v39_v13 = vsel %vm19_vm0, %v38_v12, 0.0 }
  0xa0   :  { %v90_v10 = vpop.eup %89 }
  0xa1   :  { %v26_v11 = vsel %vm19_vm0, %v90_v10, 0.0 }
  0xa2   :  { %27 = vadd.xlane.f32.xlu1 %v26_v11 }
  0xa6   :  { %40 = vadd.xlane.f32.xlu1 %v39_v13 }
 0x12f   :  { %v28_v15 = vpop.xlane.xlu1 %27 }
 0x130   :  { %91 = vlog2.f32 %v28_v15 }
 0x133   :  { %v41_v18 = vpop.xlane.xlu1 %40 }
 0x13a   :  { %v92_v16 = vpop.eup %91 }
 0x13b   :  { %v30_v17 = vmul.f32 0.6931472, %v92_v16 }
 0x13d   :  { %v42_v19 = vsub.f32 %v41_v18, %v30_v17 }
 0x13f   :  { %v43_v20 = vmul.f32 1.442695, %v42_v19 }
 0x141   :  { %93 = vpow2.f32 %v43_v20 }
 0x14b   :  { %v94_v21 = vpop.eup %93 }
 0x14c   :  { %v45_v22 = vsub.f32 1.0, %v94_v21 }
 0x14e   :  { %v46_v23 = vmul.f32 %v45_v22, %v45_v22 }
 0x150   :  { %v47_v24 = vmul.f32 %v46_v23, %v42_v19 }
 0x152   :  { %v56_v25 = vrot.slane %v47_v24, 4 }
 0x154   :  { %v57_v26 = vadd.f32 %v56_v25, %v47_v24 }
 0x156   :  { %v58_v27 = vrot.slane %v57_v26, 2 }
 0x158   :  { %v59_v28 = vadd.f32 %v58_v27, %v57_v26 }
 0x15a   :  { %v60_v29 = vrot.slane %v59_v28, 1 }
 0x15c   :  { %v61_v31 = vadd.f32 %v60_v29, %v59_v28 }
 0x15e   :  { %v62_v32 = vadd.f32 %v61_v31, %v55_v30 }
 0x160   :  { %64 = vst.msk [vmem:[#allocation2] sm:$0x1] %vm16_vm2, %v62_v32 }
 0x167   :  { %v68_v33 = vld [vmem:[#allocation2] sm:$0x1] }
 0x168   :  { %v69_v34 = vmul.f32 -0.125, %v68_v33 }
 0x16a   :  { %70 = vst.msk [vmem:[#allocation3] sm:$0x1] %vm16_vm2, %v69_v34 }
 0x16b   :  { %106 = shalt.err (!%p103_p4)
}
 0x16c   :  { %s107_s17 = scalar_lea.hbm %s163_s2, 16 }
 0x16d   :  { %p108_p5 = scmp.ne.s32.totalorder %s163_s2, %s107_s17  ;;  %p111_p6 = scmp.lt.u32.totalorder %s107_s17, %s163_s2 }
 0x16f   :  { %p113_p7 = pnand %p111_p6, %p108_p5 }
 0x171   :  { %116 = shalt.err (!%p113_p7)
}
 0x172   :  { %80 = dma.vmem_to_hbm [thread:$0]  %s78_s1, 16, %s163_s2, [#allocation4]  }
 0x173   :  { %117 = dma.done.wait [#allocation4], 16  }
 0x174   :  { %118 = vsyncadd [#allocation4], 4294967280 }
 0x175   :  { %84 = vsyncpa [#allocation4], 1 }

</bundles_post_ra>
